<compile_context>
chip_gen: v7x
topology: tpu7x:2x2x1
jax: 0.10.0
libtpu: 0.0.40
codegen_flags: <defaults>
</compile_context>

<pallas_src>
import jax
import jax.numpy as jnp
from jax import lax
from jax.experimental import pallas as pl
from jax.experimental.pallas import tpu as pltpu


# ----------------------------------------------------------------------------
# Table construction (matches the PyTorch __init__ exactly, incl. the
# 2*(i+1)/d_model exponent the reference module uses for the cos columns).
# ----------------------------------------------------------------------------
def build_pe_table(d_model: int, max_seq_len: int,
                   dtype=jnp.float32) -> jnp.ndarray:
    pos = jnp.arange(max_seq_len, dtype=jnp.float32)[:, None]          # (L, 1)
    i = jnp.arange(0, d_model, 2, dtype=jnp.float32)[None, :]          # (1, D/2)
    sin_part = jnp.sin(pos / jnp.power(10000.0, 2.0 * i / d_model))
    cos_part = jnp.cos(pos / jnp.power(10000.0, 2.0 * (i + 1.0) / d_model))
    pe = jnp.zeros((max_seq_len, d_model), jnp.float32)
    pe = pe.at[:, 0::2].set(sin_part)
    pe = pe.at[:, 1::2].set(cos_part)
    return pe.astype(dtype)


def _round_up(x: int, m: int) -> int:
    return ((x + m - 1) // m) * m


def _available_vmem_bytes(default_bytes: int = 64 * 1024 * 1024) -> int:
    """Per-core VMEM capacity; conservative 64 MiB (v7x) if the query fails."""
    try:
        return int(pltpu.get_tpu_info().vmem_capacity_bytes)
    except Exception:
        return default_bytes


_ONEHOT_MAX_LEN = 2048              # one-hot MXU gather for tables this small
_TARGET_BLOCK_BYTES = 2 * 1024 * 1024   # >=2 MiB output per grid step
_MAX_BLOCK_BYTES = 8 * 1024 * 1024
_ONEHOT_INTERM_BYTES = 4 * 1024 * 1024  # cap the (tile, L) one-hot intermediate
_TINY_OUT_BYTES = 64 * 1024         # below this, plain XLA gather wins


def _xla_gather(pe: jnp.ndarray, indexes: jnp.ndarray) -> jnp.ndarray:
    max_seq_len, _ = pe.shape
    idx = indexes.astype(jnp.int32)
    idx = jnp.where(idx < 0, idx + max_seq_len, idx)
    idx = jnp.clip(idx, 0, max_seq_len - 1)
    return jnp.take(pe, idx, axis=0)


# ----------------------------------------------------------------------------
# Pallas gather
# ----------------------------------------------------------------------------
def absolute_positional_encoding(pe: jnp.ndarray, indexes: jnp.ndarray,
                                 *, force_pallas: bool = False) -> jnp.ndarray:
    """Equivalent of PyTorch `self.pe[indexes.type(torch.int64)]`."""
    max_seq_len, d_model = pe.shape
    elt = pe.dtype.itemsize

    flat_idx = indexes.reshape(-1).astype(jnp.int32)
    n = flat_idx.shape[0]
    if n == 0:
        return jnp.zeros(indexes.shape + (d_model,), pe.dtype)

    out_bytes = n * d_model * elt
    if out_bytes < _TINY_OUT_BYTES and not force_pallas:
        # pallas_call launch + padding overhead dominates for tiny gathers.
        return _xla_gather(pe, indexes)

    # ---- tile selection: target >= 2 MiB of output rows per grid step ------
    row_bytes = d_model * elt
    tile = max(2048, -(-_TARGET_BLOCK_BYTES // row_bytes))
    tile = min(tile, max(128, _MAX_BLOCK_BYTES // row_bytes))
    use_onehot = max_seq_len <= _ONEHOT_MAX_LEN
    if use_onehot:
        tile = min(tile, max(128, _ONEHOT_INTERM_BYTES // (max_seq_len * 4)))
    tile = _round_up(tile, 128)
    tile = min(tile, _round_up(n, 128))

    n_pad = _round_up(n, tile)
    num_tiles = n_pad // tile

    # ---- VMEM budget (pe is fetched once but the pipeline keeps 2 buffers) -
    pe_bytes = max_seq_len * d_model * elt
    out_block_bytes = tile * d_model * elt
    idx_block_bytes = tile * 4
    onehot_bytes = tile * max_seq_len * 4 if use_onehot else 0
    need_vmem = (2 * pe_bytes + 2 * out_block_bytes + 2 * idx_block_bytes
                 + onehot_bytes + (4 << 20))
    if need_vmem > _available_vmem_bytes():
        # TODO(synk): HBM-resident pe + manual pltpu.make_async_copy row-DMA
        # gather for tables too large to keep in VMEM (e.g. > 64 MiB on v7x).
        return _xla_gather(pe, indexes)
    vmem_limit = int(max(16 << 20, need_vmem))

    if n_pad != n:
        flat_idx = jnp.concatenate(
            [flat_idx, jnp.zeros((n_pad - n,), jnp.int32)])
    idx2d = flat_idx.reshape(n_pad, 1)          # sublane-major index column

    # ---- kernels ------------------------------------------------------------
    def onehot_kernel(idx_ref, pe_ref, out_ref):
        # idx_ref: (tile, 1) int32 VMEM block
        # pe_ref : (max_seq_len, d_model) table, VMEM-resident (DMA'd once)
        # out_ref: (tile, d_model) output block
        idx = idx_ref[...]                                     # (tile, 1)
        idx = jnp.where(idx < 0, idx + max_seq_len, idx)       # torch negatives
        idx = jnp.clip(idx, 0, max_seq_len - 1)                # safety clamp
        cols = lax.broadcasted_iota(jnp.int32, (tile, max_seq_len), 1)
        one_hot = (cols == idx).astype(pe_ref.dtype)           # (tile, L)
        out_ref[...] = jnp.dot(
            one_hot, pe_ref[...],
            preferred_element_type=jnp.float32).astype(out_ref.dtype)

    def take_kernel(idx_ref, pe_ref, out_ref):
        # Vectorized gather path for larger (but still VMEM-resident) tables.
        idx = idx_ref[...][:, 0]                               # (tile,)
        idx = jnp.where(idx < 0, idx + max_seq_len, idx)
        idx = jnp.clip(idx, 0, max_seq_len - 1)
        out_ref[...] = jnp.take(pe_ref[...], idx, axis=0).astype(out_ref.dtype)

    kernel = onehot_kernel if use_onehot else take_kernel

    out_flat = pl.pallas_call(
        kernel,
        out_shape=jax.ShapeDtypeStruct((n_pad, d_model), pe.dtype),
        grid_spec=pltpu.PrefetchScalarGridSpec(
            num_scalar_prefetch=0,
            grid=(num_tiles,),
            in_specs=[
                # Per-step index column (lane dim == full dim 1, sublane-dense).
                pl.BlockSpec((tile, 1), lambda t: (t, 0)),
                # pe table: constant block index -> DMA'd from HBM once, then
                # VMEM-resident across all grid steps.
                pl.BlockSpec((max_seq_len, d_model), lambda t: (0, 0)),
            ],
            out_specs=pl.BlockSpec((tile, d_model), lambda t: (t, 0)),
        ),
        compiler_params=pltpu.CompilerParams(
            dimension_semantics=("parallel",),   # shard tiles across TCs (v7x)
            vmem_limit_bytes=vmem_limit,
        ),
    )(idx2d, pe)

    return out_flat[:n].reshape(indexes.shape + (d_model,))


# ----------------------------------------------------------------------------
# Demo / correctness check
# ----------------------------------------------------------------------------
if __name__ == "__main__":
    key = jax.random.PRNGKey(0)
    k1, k2 = jax.random.split(key)

    # --- test 1: spec-consistent small shapes, forced through the kernel ----
    d_model, max_seq_len = 128, 64
    batch, seq = 2, 8
    pe = build_pe_table(d_model, max_seq_len)
    idx1 = jax.random.randint(k1, (batch, seq), 0, max_seq_len, dtype=jnp.int32)
    out1 = jax.block_until_ready(
        absolute_positional_encoding(pe, idx1, force_pallas=True))
    ref1 = jnp.take(pe, idx1, axis=0)
    assert out1.shape == (batch, seq, d_model)
    assert bool(jnp.allclose(out1, ref1, atol=1e-6, rtol=0.0))

    # --- test 2: padding, negative indices, d_model below one lane tile -----
    d_model2, max_seq_len2 = 64, 200
    pe2 = build_pe_table(d_model2, max_seq_len2)
    idx2 = jax.random.randint(k2, (2, 300), -max_seq_len2, max_seq_len2,
                              dtype=jnp.int32)
    out2 = jax.block_until_ready(
        absolute_positional_encoding(pe2, idx2, force_pallas=True))
    wrapped = jnp.where(idx2 < 0, idx2 + max_seq_len2, idx2)
    ref2 = jnp.take(pe2, wrapped, axis=0)
    assert out2.shape == (2, 300, d_model2)
    assert bool(jnp.allclose(out2, ref2, atol=1e-6, rtol=0.0))

    print("KERNEL_OK")
</pallas_src>

<mosaic_0001>
module attributes {stable_mosaic.version = 11 : i64} {
  func.func @onehot_kernel(%arg0: i32, %arg1: memref<128x1xi32, #tpu.memory_space<vmem>>, %arg2: memref<64x128xf32, #tpu.memory_space<vmem>>, %arg3: memref<128x128xf32, #tpu.memory_space<vmem>>) attributes {dimension_semantics = [#tpu.dimension_semantics<parallel>], iteration_bounds = array<i64: 1>, scalar_prefetch = 0 : i64, scratch_operands = 0 : i64, tpu.core_type = #tpu.core_type<tc>, window_params = [{transform_indices = @transform_0, window_bounds = array<i64: 128, 1>}, {pipeline_mode = #tpu.pipeline_mode<synchronous>, transform_indices = @transform_1, window_bounds = array<i64: 64, 128>}, {transform_indices = @transform_2, window_bounds = array<i64: 128, 128>}]} {
    %c0 = arith.constant 0 : index
    %c0_0 = arith.constant 0 : index
    %0 = vector.load %arg1[%c0, %c0_0] : memref<128x1xi32, #tpu.memory_space<vmem>>, vector<128x1xi32>
    %c0_i32 = arith.constant 0 : i32
    %1 = vector.broadcast %c0_i32 : i32 to vector<128x1xi32>
    %2 = arith.cmpi slt, %0, %1 : vector<128x1xi32>
    %c64_i32 = arith.constant 64 : i32
    %3 = vector.broadcast %c64_i32 : i32 to vector<128x1xi32>
    %4 = arith.addi %0, %3 : vector<128x1xi32>
    %5 = arith.select %2, %4, %0 : vector<128x1xi1>, vector<128x1xi32>
    %c0_i32_1 = arith.constant 0 : i32
    %c63_i32 = arith.constant 63 : i32
    %6 = vector.broadcast %c0_i32_1 : i32 to vector<128x1xi32>
    %7 = arith.maxsi %6, %5 : vector<128x1xi32>
    %8 = vector.broadcast %c63_i32 : i32 to vector<128x1xi32>
    %9 = arith.minsi %8, %7 : vector<128x1xi32>
    %10 = tpu.iota {dimensions = array<i32: 1>} : vector<128x64xi32>
    %11 = vector.broadcast %9 : vector<128x1xi32> to vector<128x64xi32>
    %12 = arith.cmpi eq, %10, %11 : vector<128x64xi32>
    %13 = arith.extui %12 : vector<128x64xi1> to vector<128x64xi32>
    %14 = arith.sitofp %13 : vector<128x64xi32> to vector<128x64xf32>
    %c0_2 = arith.constant 0 : index
    %c0_3 = arith.constant 0 : index
    %15 = vector.load %arg2[%c0_2, %c0_3] : memref<64x128xf32, #tpu.memory_space<vmem>>, vector<64x128xf32>
    %cst = arith.constant dense<0.000000e+00> : vector<128x128xf32>
    %16 = tpu.matmul %14, %15, %cst {dimension_numbers = #tpu.dot_dimension_numbers<[1], [0], [0], [1], [0, 0, 1, 1], [], []>} : vector<128x64xf32>, vector<64x128xf32>, vector<128x128xf32> -> vector<128x128xf32>
    %c0_4 = arith.constant 0 : index
    %c0_5 = arith.constant 0 : index
    %17 = vector.load %arg3[%c0_4, %c0_5] : memref<128x128xf32, #tpu.memory_space<vmem>>, vector<128x128xf32>
    tpu.vector_store %arg3[%c0_4, %c0_5], %16 {strides = array<i32>} : memref<128x128xf32, #tpu.memory_space<vmem>>, vector<128x128xf32>,
    return
  }
  func.func @transform_0(%arg0: i32) -> (i32, i32) {
    %c0_i32 = arith.constant 0 : i32
    %c0_i32_0 = arith.constant 0 : i32
    return %arg0, %c0_i32 : i32, i32
  }
  func.func @transform_1(%arg0: i32) -> (i32, i32) {
    %c0_i32 = arith.constant 0 : i32
    %c0_i32_0 = arith.constant 0 : i32
    %c0_i32_1 = arith.constant 0 : i32
    return %c0_i32, %c0_i32_0 : i32, i32
  }
  func.func @transform_2(%arg0: i32) -> (i32, i32) {
    %c0_i32 = arith.constant 0 : i32
    %c0_i32_0 = arith.constant 0 : i32
    return %arg0, %c0_i32 : i32, i32
  }
}

</mosaic_0001>

<bundles_post_ra>
// kernel: tpu_custom_call.1
= control target key start
LH: loop header
LB: loop body
LE: loop exit
PB: predicated region body
PF: predicated region fallthrough
CT: control target
= control target key end

     0   :  { %v623_v3 = vmov 0   ;;  %s763_s0 = inlined_call_operand.vmem [shape: s32[128,1], index: 0, kind: input, shape index: {}]   ;;  %s764_s1 = inlined_call_operand.vmem [shape: f32[64,128], index: 1, kind: input, shape index: {}]   ;;  %s765_s2 = inlined_call_operand.hbm [shape: f32[128,128], index: 2, kind: output, shape index: {}]  }
   0x1   :  { %v13_v0 = vld [vmem:[%s763_s0 + $0x8] sm:$0xff]  ;;  %v12_v1 = vld [vmem:[%s763_s0] sm:$0xff]  ;;  %598 = vset.pattern.permute.xlu1 %v623_v3  ;;  %597 = vset.pattern.permute.xlu0 %v623_v3  ;;  %v22_v7 = vld [vmem:[%s763_s0 + $0x50] sm:$0xff] }
   0x2   :  { %v21_v2 = vld [vmem:[%s763_s0 + $0x48] sm:$0xff]  ;;  %vm29_vm0 = vcmp.lt.s32.totalorder %v13_v0, 0  ;;  %v45_v4 = vadd.s32 64, %v13_v0  ;;  %vm28_vm1 = vcmp.lt.s32.totalorder %v12_v1, 0  ;;  %v44_v5 = vadd.s32 64, %v12_v1  ;;  %v20_v6 = vld [vmem:[%s763_s0 + $0x40] sm:$0xff] }
   0x3   :  { %vm37_vm2 = vcmp.lt.s32.totalorder %v21_v2, 0  ;;  %v53_v8 = vadd.s32 64, %v21_v2  ;;  %vm36_vm3 = vcmp.lt.s32.totalorder %v20_v6, 0  ;;  %v52_v9 = vadd.s32 64, %v20_v6  ;;  %v14_v17 = vld [vmem:[%s763_s0 + $0x10] sm:$0xff]  ;;  %v23_v20 = vld [vmem:[%s763_s0 + $0x58] sm:$0xff] }
   0x4   :  { %v61_v10 = vsel %vm29_vm0, %v45_v4, %v13_v0  ;;  %v60_v11 = vsel %vm28_vm1, %v44_v5, %v12_v1  ;;  %vm38_vm4 = vcmp.lt.s32.totalorder %v22_v7, 0  ;;  %v54_v12 = vadd.s32 64, %v22_v7  ;;  %v15_v23 = vld [vmem:[%s763_s0 + $0x18] sm:$0xff]  ;;  %v24_v24 = vld [vmem:[%s763_s0 + $0x60] sm:$0xff] }
   0x5   :  { %vm78_vm5 = vcmp.gt.s32.totalorder %v61_v10, 0  ;;  %vm76_vm6 = vcmp.gt.s32.totalorder %v60_v11, 0  ;;  %v69_v13 = vsel %vm37_vm2, %v53_v8, %v21_v2  ;;  %v68_v14 = vsel %vm36_vm3, %v52_v9, %v20_v6 }
   0x6   :  { %v79_v15 = vsel %vm78_vm5, %v61_v10, 0  ;;  %v77_v16 = vsel %vm76_vm6, %v60_v11, 0  ;;  %vm94_vm7 = vcmp.gt.s32.totalorder %v69_v13, 0  ;;  %vm92_vm8 = vcmp.gt.s32.totalorder %v68_v14, 0 }
   0x7   :  { %vm110_vm9 = vcmp.lt.s32.totalorder %v79_v15, 63  ;;  %vm108_vm10 = vcmp.lt.s32.totalorder %v77_v16, 63  ;;  %v95_v18 = vsel %vm94_vm7, %v69_v13, 0  ;;  %v93_v19 = vsel %vm92_vm8, %v68_v14, 0 }
   0x8   :  { %v111_v21 = vsel %vm110_vm9, %v79_v15, 63  ;;  %v109_v22 = vsel %vm108_vm10, %v77_v16, 63  ;;  %vm126_vm11 = vcmp.lt.s32.totalorder %v95_v18, 63  ;;  %vm124_vm12 = vcmp.lt.s32.totalorder %v93_v19, 63 }
   0x9   :  { %146 = vperm.xlu1 %598, %v111_v21   ;;  %143 = vperm.xlu0 %597, %v109_v22   ;;  %v127_v25 = vsel %vm126_vm11, %v95_v18, 63  ;;  %v125_v26 = vsel %vm124_vm12, %v93_v19, 63  ;;  %v70_v27 = vsel %vm38_vm4, %v54_v12, %v22_v7  ;;  %vm30_vm13 = vcmp.lt.s32.totalorder %v14_v17, 0 }
   0xa   :  { %vm96_vm14 = vcmp.gt.s32.totalorder %v70_v27, 0  ;;  %v46_v28 = vadd.s32 64, %v14_v17  ;;  %vm39_vm15 = vcmp.lt.s32.totalorder %v23_v20, 0  ;;  %v55_v29 = vadd.s32 64, %v23_v20 }
   0xb   :  { %v97_v30 = vsel %vm96_vm14, %v70_v27, 0  ;;  %vm31_vm0 = vcmp.lt.s32.totalorder %v15_v23, 0  ;;  %v47_v31 = vadd.s32 64, %v15_v23  ;;  %vm40_vm1 = vcmp.lt.s32.totalorder %v24_v24, 0 }
   0xc   :  { %7 = vsyncpa [#allocation3], 0  ;;  %vm128_vm2 = vcmp.lt.s32.totalorder %v97_v30, 63  ;;  %v62_v32 = vsel %vm30_vm13, %v46_v28, %v14_v17  ;;  %v71_v33 = vsel %vm39_vm15, %v55_v29, %v23_v20  ;;  %v56_v34 = vadd.s32 64, %v24_v24  ;;  %v16_v40 = vld [vmem:[%s763_s0 + $0x20] sm:$0xff]  ;;  %v25_v42 = vld [vmem:[%s763_s0 + $0x68] sm:$0xff] }
   0xd   :  { %170 = vperm.xlu1 %598, %v127_v25   ;;  %167 = vperm.xlu0 %597, %v125_v26   ;;  %v129_v35 = vsel %vm128_vm2, %v97_v30, 63  ;;  %vm80_vm3 = vcmp.gt.s32.totalorder %v62_v32, 0  ;;  %vm98_vm5 = vcmp.gt.s32.totalorder %v71_v33, 0  ;;  %v63_v36 = vsel %vm31_vm0, %v47_v31, %v15_v23  ;;  %v17_v43 = vld [vmem:[%s763_s0 + $0x28] sm:$0xff]  ;;  %v26_v47 = vld [vmem:[%s763_s0 + $0x70] sm:$0xff]  ;;  %v27_v62 = vld [vmem:[%s763_s0 + $0x78] sm:$0xff] }
   0xe   :  { %v81_v37 = vsel %vm80_vm3, %v62_v32, 0  ;;  %v99_v38 = vsel %vm98_vm5, %v71_v33, 0  ;;  %vm82_vm4 = vcmp.gt.s32.totalorder %v63_v36, 0  ;;  %v72_v39 = vsel %vm40_vm1, %v56_v34, %v24_v24  ;;  %v18_v50 = vld [vmem:[%s763_s0 + $0x30] sm:$0xff]  ;;  %v19_v1 = vld [vmem:[%s763_s0 + $0x38] sm:$0xff]  ;;  %v238_v4 = vld [vmem:[%s764_s1] sm:$0xff] }
   0xf   :  { %vm112_vm6 = vcmp.lt.s32.totalorder %v81_v37, 63  ;;  %vm130_vm7 = vcmp.lt.s32.totalorder %v99_v38, 63  ;;  %v83_v41 = vsel %vm82_vm4, %v63_v36, 0  ;;  %vm100_vm8 = vcmp.gt.s32.totalorder %v72_v39, 0  ;;  %v239_v5 = vld [vmem:[%s764_s1 + $0x8] sm:$0xff]  ;;  %v240_v8 = vld [vmem:[%s764_s1 + $0x10] sm:$0xff] }
  0x10   :  { %v113_v44 = vsel %vm112_vm6, %v81_v37, 63  ;;  %v131_v45 = vsel %vm130_vm7, %v99_v38, 63  ;;  %vm114_vm9 = vcmp.lt.s32.totalorder %v83_v41, 63  ;;  %v101_v46 = vsel %vm100_vm8, %v72_v39, 0  ;;  %v241_v9 = vld [vmem:[%s764_s1 + $0x18] sm:$0xff]  ;;  %v242_v17 = vld [vmem:[%s764_s1 + $0x20] sm:$0xff] }
  0x11   :  { %173 = vperm.xlu1 %598, %v129_v35   ;;  %149 = vperm.xlu0 %597, %v113_v44   ;;  %v115_v48 = vsel %vm114_vm9, %v83_v41, 63  ;;  %vm132_vm10 = vcmp.lt.s32.totalorder %v101_v46, 63  ;;  %vm32_vm11 = vcmp.lt.s32.totalorder %v16_v40, 0  ;;  %v48_v49 = vadd.s32 64, %v16_v40  ;;  %v243_v18 = vld [vmem:[%s764_s1 + $0x28] sm:$0xff]  ;;  %v244_v24 = vld [vmem:[%s764_s1 + $0x30] sm:$0xff] }
  0x12   :  { %v133_v51 = vsel %vm132_vm10, %v101_v46, 63  ;;  %vm41_vm12 = vcmp.lt.s32.totalorder %v25_v42, 0  ;;  %v57_v52 = vadd.s32 64, %v25_v42  ;;  %vm33_vm13 = vcmp.lt.s32.totalorder %v17_v43, 0  ;;  %v245_v25 = vld [vmem:[%s764_s1 + $0x38] sm:$0xff]  ;;  %s625_s1 = smov [#allocation2]  }
  0x13   :  { %v64_v53 = vsel %vm32_vm11, %v48_v49, %v16_v40  ;;  %v49_v54 = vadd.s32 64, %v17_v43  ;;  %vm42_vm14 = vcmp.lt.s32.totalorder %v26_v47, 0  ;;  %v58_v55 = vadd.s32 64, %v26_v47  ;;  %s461_s28 = sshll.u32 %s625_s1, 4  ;;  %s462_s28 = int_to_ptr.vmem [resolvable:$true] %s461_s28 }
  0x14   :  { %vm84_vm15 = vcmp.gt.s32.totalorder %v64_v53, 0  ;;  %v73_v56 = vsel %vm41_vm12, %v57_v52, %v25_v42  ;;  %vm34_vm0 = vcmp.lt.s32.totalorder %v18_v50, 0  ;;  %v50_v57 = vadd.s32 64, %v18_v50  ;;  %s599_s29 = scalar_lea.vmem %s462_s28, 2048  ;;  %p604_p1 = scmp.lt.s32.totalorder %s462_s28, %s462_s28 }
  0x15   :  { %176 = vperm.xlu1 %598, %v131_v45   ;;  %152 = vperm.xlu0 %597, %v115_v48   ;;  %v85_v58 = vsel %vm84_vm15, %v64_v53, 0  ;;  %vm102_vm1 = vcmp.gt.s32.totalorder %v73_v56, 0  ;;  %v65_v59 = vsel %vm33_vm13, %v49_v54, %v17_v43  ;;  %v74_v60 = vsel %vm42_vm14, %v58_v55, %v26_v47  ;;  %p600_p0 = scmp.ne.s32.totalorder %s462_s28, %s599_s29  ;;  %p605_p2 = scmp.lt.s32.totalorder %s599_s29, %s599_s29 }
  0x16   :  { %vm116_vm2 = vcmp.lt.s32.totalorder %v85_v58, 63  ;;  %v103_v61 = vsel %vm102_vm1, %v73_v56, 0  ;;  %vm86_vm3 = vcmp.gt.s32.totalorder %v65_v59, 0  ;;  %vm104_vm5 = vcmp.gt.s32.totalorder %v74_v60, 0 }
  0x17   :  { %v117_v63 = vsel %vm116_vm2, %v85_v58, 63  ;;  %vm134_vm4 = vcmp.lt.s32.totalorder %v103_v61, 63  ;;  %v87_v0 = vsel %vm86_vm3, %v65_v59, 0  ;;  %v105_v2 = vsel %vm104_vm5, %v74_v60, 0  ;;  %p606_p3 = por %p605_p2, %p604_p1 }
  0x18   :  { %vm118_vm6 = vcmp.lt.s32.totalorder %v87_v0, 63  ;;  %v66_v3 = vsel %vm34_vm0, %v50_v57, %v18_v50  ;;  %v135_v6 = vsel %vm134_vm4, %v103_v61, 63  ;;  %vm43_vm8 = vcmp.lt.s32.totalorder %v27_v62, 0 }
  0x19   :  { %179 = vperm.xlu1 %598, %v133_v51   ;;  %155 = vperm.xlu0 %597, %v117_v63   ;;  %v119_v7 = vsel %vm118_vm6, %v87_v0, 63  ;;  %vm88_vm7 = vcmp.gt.s32.totalorder %v66_v3, 0  ;;  %v59_v11 = vadd.s32 64, %v27_v62  ;;  %vm35_vm9 = vcmp.lt.s32.totalorder %v19_v1, 0  ;;  %p607_p4 = pnand %p606_p3, %p600_p0 }
  0x1a   :  { %v89_v10 = vsel %vm88_vm7, %v66_v3, 0  ;;  %v51_v12 = vadd.s32 64, %v19_v1  ;;  %vm136_vm10 = vcmp.lt.s32.totalorder %v105_v2, 63  ;;  %v568_v13 = vpack.c.bf16 %v239_v5, %v238_v4 }
  0x1b   :  { %vm120_vm11 = vcmp.lt.s32.totalorder %v89_v10, 63  ;;  %v75_v14 = vsel %vm43_vm8, %v59_v11, %v27_v62  ;;  %v572_v16 = vpack.c.bf16 %v241_v9, %v240_v8  ;;  %v137_v19 = vsel %vm136_vm10, %v105_v2, 63 }
  0x1c   :  { %v67_v15 = vsel %vm35_vm9, %v51_v12, %v19_v1  ;;  %vm106_vm12 = vcmp.gt.s32.totalorder %v75_v14, 0  ;;  %v121_v20 = vsel %vm120_vm11, %v89_v10, 63  ;;  %569 = vmatprep.subr.bf16.mxu0 %v568_v13  ;;  %584 = vmatprep.subr.bf16.mxu1 %v568_v13  ;;  %v576_v23 = vpack.c.bf16 %v243_v18, %v242_v17 }
  0x1d   :  { %182 = vperm.xlu1 %598, %v135_v6   ;;  %158 = vperm.xlu0 %597, %v119_v7   ;;  %vm90_vm13 = vcmp.gt.s32.totalorder %v67_v15, 0  ;;  %v107_v21 = vsel %vm106_vm12, %v75_v14, 0  ;;  %v580_v28 = vpack.c.bf16 %v245_v25, %v244_v24  ;;  %v140_v29 = vlaneseq }
  0x1e   :  { %v91_v22 = vsel %vm90_vm13, %v67_v15, 0  ;;  %vm138_vm14 = vcmp.lt.s32.totalorder %v107_v21, 63  ;;  %571 = vmatpush3.bf16.msra.mxu0 %v568_v13  ;;  %588 = vmatpush3.bf16.msra.mxu1 %v568_v13  ;;  %vm246_vm0 = vcmask 523264   ;;  %v624_v33 = vmov 0.0  }
  0x1f   :  { %vm122_vm15 = vcmp.lt.s32.totalorder %v91_v22, 63  ;;  %573 = vmatprep.subr.bf16.mxu0 %v572_v16  ;;  %585 = vmatprep.subr.bf16.mxu1 %v572_v16  ;;  %v139_v26 = vsel %vm138_vm14, %v107_v21, 63  ;;  %v717_v30 = vand.u32 127, %v140_v29 }
  0x20   :  { %v123_v27 = vsel %vm122_vm15, %v91_v22, 63 }
  0x21   :  { %185 = vperm.xlu1 %598, %v137_v19   ;;  %161 = vperm.xlu0 %597, %v121_v20  }
  0x22   :  { %575 = vmatpush3.bf16.msra.mxu0 %v572_v16  ;;  %589 = vmatpush3.bf16.msra.mxu1 %v572_v16 }
  0x23   :  { %577 = vmatprep.subr.bf16.mxu0 %v576_v23  ;;  %586 = vmatprep.subr.bf16.mxu1 %v576_v23 }
  0x25   :  { %188 = vperm.xlu1 %598, %v139_v26   ;;  %164 = vperm.xlu0 %597, %v123_v27  }
  0x26   :  { %579 = vmatpush3.bf16.msra.mxu0 %v576_v23  ;;  %590 = vmatpush3.bf16.msra.mxu1 %v576_v23 }
  0x27   :  { %581 = vmatprep.subr.bf16.mxu0 %v580_v28  ;;  %587 = vmatprep.subr.bf16.mxu1 %v580_v28 }
  0x2a   :  { %583 = vmatpush3.bf16.msra.mxu0 %v580_v28  ;;  %591 = vmatpush3.bf16.msra.mxu1 %v580_v28 }
  0x88   :  { %v147_v31 = vpop.permute.xlu1 %146  ;;  %v144_v32 = vpop.permute.xlu0 %143 }
  0x89   :  { %vm191_vm1 = vcmp.eq.s32.totalorder %v717_v30, %v147_v31  ;;  %vm190_vm2 = vcmp.eq.s32.totalorder %v717_v30, %v144_v32 }
  0x8a   :  { %v473_v34 = vsel %vm191_vm1, 1.0, %v624_v33  ;;  %v472_v35 = vsel %vm190_vm2, 1.0, %v624_v33 }
  0x8b   :  { %544 = vmatprep.mubr.msk.f32.mxu0 %vm246_vm0, %v472_v35 }
  0x8c   :  { %v171_v36 = vpop.permute.xlu1 %170  ;;  %545 = vmatmul.mubr.msk.f32.vlgmr.msra.gmra.mrb[0].mxu0 %vm246_vm0, %v473_v34  ;;  %v168_v37 = vpop.permute.xlu0 %167 }
  0x8d   :  { %vm199_vm3 = vcmp.eq.s32.totalorder %v717_v30, %v171_v36  ;;  %vm198_vm5 = vcmp.eq.s32.totalorder %v717_v30, %v168_v37 }
  0x8e   :  { %v481_v38 = vsel %vm199_vm3, 1.0, %v624_v33  ;;  %v480_v39 = vsel %vm198_vm5, 1.0, %v624_v33 }
  0x8f   :  { %556 = vmatprep.mubr.msk.f32.mxu1 %vm246_vm0, %v480_v39 }
  0x90   :  { %v174_v40 = vpop.permute.xlu1 %173  ;;  %557 = vmatmul.mubr.msk.f32.vlgmr.msra.gmra.mrb[0].mxu1 %vm246_vm0, %v481_v38  ;;  %v150_v41 = vpop.permute.xlu0 %149 }
  0x91   :  { %vm200_vm4 = vcmp.eq.s32.totalorder %v717_v30, %v174_v40  ;;  %vm192_vm6 = vcmp.eq.s32.totalorder %v717_v30, %v150_v41 }
  0x92   :  { %v482_v42 = vsel %vm200_vm4, 1.0, %v624_v33  ;;  %v474_v43 = vsel %vm192_vm6, 1.0, %v624_v33 }
  0x93   :  { %547 = vmatprep.mubr.msk.f32.mxu0 %vm246_vm0, %v474_v43  ;;  %559 = vmatprep.mubr.msk.f32.mxu1 %vm246_vm0, %v482_v42 }
  0x94   :  { %v177_v44 = vpop.permute.xlu1 %176  ;;  %v153_v45 = vpop.permute.xlu0 %152 }
  0x95   :  { %vm201_vm7 = vcmp.eq.s32.totalorder %v717_v30, %v177_v44  ;;  %vm193_vm8 = vcmp.eq.s32.totalorder %v717_v30, %v153_v45 }
  0x96   :  { %v483_v46 = vsel %vm201_vm7, 1.0, %v624_v33  ;;  %v475_v47 = vsel %vm193_vm8, 1.0, %v624_v33 }
  0x97   :  { %548 = vmatmul.mubr.msk.f32.gmra.mrb[2].mxu0 %vm246_vm0, %v475_v47  ;;  %560 = vmatmul.mubr.msk.f32.gmra.mrb[2].mxu1 %vm246_vm0, %v483_v46 }
  0x98   :  { %v180_v48 = vpop.permute.xlu1 %179  ;;  %v156_v49 = vpop.permute.xlu0 %155 }
  0x99   :  { %vm202_vm9 = vcmp.eq.s32.totalorder %v717_v30, %v180_v48  ;;  %vm194_vm10 = vcmp.eq.s32.totalorder %v717_v30, %v156_v49 }
  0x9a   :  { %v484_v50 = vsel %vm202_vm9, 1.0, %v624_v33  ;;  %v476_v51 = vsel %vm194_vm10, 1.0, %v624_v33 }
  0x9b   :  { %550 = vmatprep.mubr.msk.f32.mxu0 %vm246_vm0, %v476_v51  ;;  %562 = vmatprep.mubr.msk.f32.mxu1 %vm246_vm0, %v484_v50 }
  0x9c   :  { %v183_v52 = vpop.permute.xlu1 %182  ;;  %v159_v53 = vpop.permute.xlu0 %158 }
  0x9d   :  { %vm203_vm11 = vcmp.eq.s32.totalorder %v717_v30, %v183_v52  ;;  %vm195_vm12 = vcmp.eq.s32.totalorder %v717_v30, %v159_v53 }
  0x9e   :  { %v485_v54 = vsel %vm203_vm11, 1.0, %v624_v33  ;;  %v477_v55 = vsel %vm195_vm12, 1.0, %v624_v33 }
  0x9f   :  { %551 = vmatmul.mubr.msk.f32.gmra.mrb[4].mxu0 %vm246_vm0, %v477_v55  ;;  %563 = vmatmul.mubr.msk.f32.gmra.mrb[4].mxu1 %vm246_vm0, %v485_v54 }
  0xa0   :  { %v186_v56 = vpop.permute.xlu1 %185  ;;  %v162_v57 = vpop.permute.xlu0 %161 }
  0xa1   :  { %vm204_vm13 = vcmp.eq.s32.totalorder %v717_v30, %v186_v56  ;;  %vm196_vm14 = vcmp.eq.s32.totalorder %v717_v30, %v162_v57 }
  0xa2   :  { %v486_v58 = vsel %vm204_vm13, 1.0, %v624_v33  ;;  %v478_v59 = vsel %vm196_vm14, 1.0, %v624_v33 }
  0xa3   :  { %553 = vmatprep.mubr.msk.f32.mxu0 %vm246_vm0, %v478_v59  ;;  %565 = vmatprep.mubr.msk.f32.mxu1 %vm246_vm0, %v486_v58 }
  0xa4   :  { %v189_v60 = vpop.permute.xlu1 %188  ;;  %v165_v61 = vpop.permute.xlu0 %164 }
  0xa5   :  { %vm205_vm15 = vcmp.eq.s32.totalorder %v717_v30, %v189_v60  ;;  %vm197_vm1 = vcmp.eq.s32.totalorder %v717_v30, %v165_v61 }
  0xa6   :  { %v487_v62 = vsel %vm205_vm15, 1.0, %v624_v33  ;;  %v479_v63 = vsel %vm197_vm1, 1.0, %v624_v33 }
  0xa7   :  { %554 = vmatmul.mubr.msk.f32.gmra.mrb[6].mxu0 %vm246_vm0, %v479_v63  ;;  %566 = vmatmul.mubr.msk.f32.gmra.mrb[6].mxu1 %vm246_vm0, %v487_v62 }
 0x15f   :  { %v546_v0 = vpop.f32.mrb[0].mxu0 }
 0x160   :  { %441 = vst [vmem:[#allocation2 + $0x8] sm:$0xff] %v546_v0  ;;  %v361_v1 = vpop.f32.mrb[1].mxu0 }
 0x161   :  { %440 = vst [vmem:[#allocation2] sm:$0xff] %v361_v1 }
 0x163   :  { %v558_v2 = vpop.f32.mrb[0].mxu1 }
 0x164   :  { %449 = vst [vmem:[#allocation2 + $0x48] sm:$0xff] %v558_v2  ;;  %v401_v3 = vpop.f32.mrb[1].mxu1 }
 0x165   :  { %448 = vst [vmem:[#allocation2 + $0x40] sm:$0xff] %v401_v3 }
 0x16a   :  { %v549_v4 = vpop.f32.mrb[2].mxu0  ;;  %v561_v5 = vpop.f32.mrb[2].mxu1 }
 0x16b   :  { %443 = vst [vmem:[#allocation2 + $0x18] sm:$0xff] %v549_v4  ;;  %451 = vst [vmem:[#allocation2 + $0x58] sm:$0xff] %v561_v5  ;;  %v371_v6 = vpop.f32.mrb[3].mxu0  ;;  %v411_v7 = vpop.f32.mrb[3].mxu1 }
 0x16c   :  { %442 = vst [vmem:[#allocation2 + $0x10] sm:$0xff] %v371_v6  ;;  %450 = vst [vmem:[#allocation2 + $0x50] sm:$0xff] %v411_v7 }
 0x172   :  { %v552_v8 = vpop.f32.mrb[4].mxu0  ;;  %v564_v9 = vpop.f32.mrb[4].mxu1 }
 0x173   :  { %445 = vst [vmem:[#allocation2 + $0x28] sm:$0xff] %v552_v8  ;;  %453 = vst [vmem:[#allocation2 + $0x68] sm:$0xff] %v564_v9  ;;  %v381_v10 = vpop.f32.mrb[5].mxu0  ;;  %v421_v11 = vpop.f32.mrb[5].mxu1 }
 0x174   :  { %444 = vst [vmem:[#allocation2 + $0x20] sm:$0xff] %v381_v10  ;;  %452 = vst [vmem:[#allocation2 + $0x60] sm:$0xff] %v421_v11 }
 0x17a   :  { %v555_v12 = vpop.f32.mrb[6].mxu0  ;;  %v567_v13 = vpop.f32.mrb[6].mxu1 }
 0x17b   :  { %447 = vst [vmem:[#allocation2 + $0x38] sm:$0xff] %v555_v12  ;;  %455 = vst [vmem:[#allocation2 + $0x78] sm:$0xff] %v567_v13  ;;  %v391_v14 = vpop.f32.mrb[7].mxu0  ;;  %v431_v15 = vpop.f32.mrb[7].mxu1 }
 0x17c   :  { %446 = vst [vmem:[#allocation2 + $0x30] sm:$0xff] %v391_v14  ;;  %454 = vst [vmem:[#allocation2 + $0x70] sm:$0xff] %v431_v15 }
 0x17d   :  { %610 = shalt.err (!%p607_p4)
}
 0x17e   :  { %s611_s4 = scalar_lea.hbm %s765_s2, 2048 }
 0x17f   :  { %p612_p5 = scmp.ne.s32.totalorder %s765_s2, %s611_s4  ;;  %p615_p6 = scmp.lt.u32.totalorder %s611_s4, %s765_s2 }
 0x181   :  { %p617_p7 = pnand %p615_p6, %p612_p5 }
 0x183   :  { %620 = shalt.err (!%p617_p7)
}
 0x184   :  { %s626_s9 = smov 128   ;;  %s627_s10 = smov 8  }
 0x185   :  { %467 = dma.vmem_to_hbm [thread:$0]  %s462_s28, 2048, %s765_s2, [#allocation3], %s626_s9, %s626_s9, %s627_s10  }
 0x186   :  { %621 = dma.done.wait [#allocation3], 2048  }
 0x187   :  { %622 = vsyncadd [#allocation3], 4294965248 }
 0x188   :  { %471 = vsyncpa [#allocation3], 1 }

</bundles_post_ra>
